<compile_context>
chip_gen: v6e
topology: v6e:2x2x1
jax: 0.10.0
libtpu: 0.0.40
codegen_flags: <defaults>
</compile_context>

<pallas_src>
import functools
import math

import jax
import jax.numpy as jnp
import numpy as np
from jax.experimental import pallas as pl
from jax.experimental.pallas import tpu as pltpu
from jax.scipy.special import erf as _erf_exact

_SQRT1_2 = 0.7071067811865476
_GD = 32          # RDB growth channels (matches the PyTorch default gd=gc=32)


def _r8(c):
    return max(8, ((c + 7) // 8) * 8)


# ----------------------------------------------------------------------------
# In-kernel GELU (erf via Abramowitz & Stegun 7.1.26, |err| <= 1.5e-7).
# The divide is replaced by an EUP approximate reciprocal + one Newton step.
# ----------------------------------------------------------------------------
def _gelu(x):
    z = x * _SQRT1_2
    az = jnp.abs(z)
    d = 1.0 + 0.3275911 * az
    r = pl.reciprocal(d, approx=True)
    r = r * (2.0 - d * r)                      # one Newton step -> ~f32 exact
    t = r
    poly = ((((1.061405429 * t - 1.453152027) * t + 1.421413741) * t
             - 0.284496736) * t + 0.254829592) * t
    erf_abs = 1.0 - poly * jnp.exp(-(az * az))
    erf_z = jnp.where(z >= 0.0, erf_abs, -erf_abs)
    return 0.5 * x * (1.0 + erf_z)


# ----------------------------------------------------------------------------
# One-time hardware-behaviour probes (run eagerly, cached).
# ----------------------------------------------------------------------------
@functools.lru_cache(maxsize=None)
def _roll_moves_to_higher_indices():
    """Probe pltpu.roll's direction once (np.roll-style vs the opposite)."""
    def probe(x_ref, o_ref):
        o_ref[...] = pltpu.roll(x_ref[...], shift=1, axis=1)

    x = jnp.arange(128, dtype=jnp.float32).reshape(1, 128)
    y = pl.pallas_call(
        probe, out_shape=jax.ShapeDtypeStruct((1, 128), jnp.float32))(x)
    return bool(float(jax.device_get(y)[0, 0]) == 127.0)


@functools.lru_cache(maxsize=None)
def _matmul_precision():
    """Use bf16x3 (Precision.HIGH) when the lowering supports it AND it is
    numerically ~f32; otherwise fall back to HIGHEST."""
    def probe(a_ref, b_ref, o_ref):
        o_ref[...] = jax.lax.dot_general(
            a_ref[...], b_ref[...], (((1,), (0,)), ((), ())),
            preferred_element_type=jnp.float32,
            precision=jax.lax.Precision.HIGH)

    try:
        a = jnp.full((8, 128), 1.0 + 2.0 ** -12, jnp.float32)
        b = jnp.ones((128, 128), jnp.float32)
        out = pl.pallas_call(
            probe, out_shape=jax.ShapeDtypeStruct((8, 128), jnp.float32))(a, b)
        val = float(jax.device_get(out)[0, 0])
        if abs(val - 128.0 * (1.0 + 2.0 ** -12)) < 1e-2:
            return jax.lax.Precision.HIGH
    except Exception:                                   # noqa: BLE001
        pass
    return jax.lax.Precision.HIGHEST


# ----------------------------------------------------------------------------
# Zero-halo flat layout helpers.
# Per image: (H+1) rows of (W+1) lanes; data at [:H, :W], zeros elsewhere.
# ----------------------------------------------------------------------------
@functools.lru_cache(maxsize=None)
def _halo_geom(N, H, W):
    Wr = W + 1
    P = N * (H + 1) * Wr
    Pp = ((P + 127) // 128) * 128
    m = np.zeros((N, H + 1, Wr), np.float32)
    m[:, :H, :W] = 1.0
    mask = np.zeros((1, Pp), np.float32)
    mask[0, :P] = m.reshape(-1)
    return Pp, Wr, jnp.asarray(mask)


def _to_shifts(deltas, Pp):
    to_higher = _roll_moves_to_higher_indices()
    return tuple(((-d) % Pp if to_higher else d % Pp) for d in deltas)


def _shifts3x3(Wr, Pp):
    deltas = tuple((ky - 1) * Wr + (kx - 1)
                   for ky in range(3) for kx in range(3))
    return _to_shifts(deltas, Pp)


def _to_halo(x):
    """(C, N, H, W) -> zero-halo flat (Cp, Pp); halo/pad lanes & rows are 0."""
    C, N, H, W = x.shape
    cp = _r8(C)
    Pp, _, _ = _halo_geom(N, H, W)
    xh = jnp.pad(x, ((0, cp - C), (0, 0), (0, 1), (0, 1)))
    flat = xh.reshape(cp, N * (H + 1) * (W + 1))
    if Pp > flat.shape[1]:
        flat = jnp.pad(flat, ((0, 0), (0, Pp - flat.shape[1])))
    return flat


def _from_halo(y, C, N, H, W):
    P = N * (H + 1) * (W + 1)
    return y[:C, :P].reshape(C, N, H + 1, W + 1)[:, :, :H, :W]


# ----------------------------------------------------------------------------
# Kernels.
# ----------------------------------------------------------------------------
def _rrdb_kernel(*refs, c0p, shifts, precision):
    """Fused RRDB: 3 dense blocks x 5 convs; im2col tap stack kept in VMEM."""
    gd = _GD
    x_ref, mask_ref = refs[0], refs[1]
    wb = refs[2:-2]          # 15 x (weight, bias)
    out_ref = refs[-2]
    stack = refs[-1]         # VMEM scratch (9*c0p + 4*9*gd, Pp)

    mask = mask_ref[...]
    x0 = x_ref[...]

    def write_taps(src, row0, c):
        for t, sh in enumerate(shifts):
            v = src if sh == 0 else pltpu.roll(src, shift=sh, axis=1)
            stack[row0 + t * c: row0 + (t + 1) * c, :] = v

    x = x0
    idx = 0
    for _ in range(3):                      # the 3 RDBs of an RRDB
        write_taps(x, 0, c0p)               # taps of the RDB input
        row = 9 * c0p
        for i in range(5):                  # the 5 dense convs of an RDB
            k_rows = 9 * c0p + i * 9 * gd
            w = wb[idx][...]
            b = wb[idx + 1][...]
            idx += 2
            acc = jax.lax.dot_general(
                w, stack[0:k_rows, :],
                dimension_numbers=(((1,), (0,)), ((), ())),
                preferred_element_type=jnp.float32,
                precision=precision)
            y = _gelu(acc + b) * mask       # re-zero halo lanes
            if i < 4:
                write_taps(y, row, gd)
                row += 9 * gd
            else:
                x = y * 0.2 + x             # RDB tail
    out_ref[...] = x * 0.2 + x0             # RRDB residual


def _scale_conv_kernel(x_ref, mask_ref, w_ref, b_ref, o_ref, *,
                       tap_shifts, phase_taps, precision):
    """Rolled-tap conv; 1 phase = Down_scale, 4 phases = Up_scale sub-pixels."""
    x = x_ref[...]
    mask = mask_ref[...]
    b = b_ref[...]
    coutp, pp = b_ref.shape[0], x_ref.shape[1]

    rolled = {}

    def tap(sh):
        if sh not in rolled:
            rolled[sh] = x if sh == 0 else pltpu.roll(x, shift=sh, axis=1)
        return rolled[sh]

    for p_i, taps in enumerate(phase_taps):
        acc = jnp.broadcast_to(b, (coutp, pp))
        for t in taps:
            acc = acc + jax.lax.dot_general(
                w_ref[t], tap(tap_shifts[t]),
                dimension_numbers=(((1,), (0,)), ((), ())),
                preferred_element_type=jnp.float32,
                precision=precision)
        o_ref[p_i * coutp:(p_i + 1) * coutp, :] = _gelu(acc) * mask


def _conv1x1_kernel(x_ref, mask_ref, w_ref, b_ref, o_ref, *, precision):
    acc = jax.lax.dot_general(
        w_ref[...], x_ref[...],
        dimension_numbers=(((1,), (0,)), ((), ())),
        preferred_element_type=jnp.float32,
        precision=precision)
    o_ref[...] = _gelu(acc + b_ref[...]) * mask_ref[...]


# ----------------------------------------------------------------------------
# pallas_call builders (cached per static configuration).
# ----------------------------------------------------------------------------
@functools.lru_cache(maxsize=None)
def _build_rrdb_call(c0p, pp, shifts, precision):
    kernel = functools.partial(_rrdb_kernel, c0p=c0p, shifts=shifts,
                               precision=precision)
    kmax = 9 * c0p + 4 * 9 * _GD
    return pl.pallas_call(
        kernel,
        out_shape=jax.ShapeDtypeStruct((c0p, pp), jnp.float32),
        scratch_shapes=[pltpu.VMEM((kmax, pp), jnp.float32)])


@functools.lru_cache(maxsize=None)
def _build_scale_call(coutp, pp, tap_shifts, phase_taps, precision):
    kernel = functools.partial(_scale_conv_kernel, tap_shifts=tap_shifts,
                               phase_taps=phase_taps, precision=precision)
    return pl.pallas_call(
        kernel,
        out_shape=jax.ShapeDtypeStruct((len(phase_taps) * coutp, pp),
                                       jnp.float32))


@functools.lru_cache(maxsize=None)
def _build_1x1_call(coutp, pp, precision):
    kernel = functools.partial(_conv1x1_kernel, precision=precision)
    return pl.pallas_call(
        kernel, out_shape=jax.ShapeDtypeStruct((coutp, pp), jnp.float32))


# ----------------------------------------------------------------------------
# Host-side weight repacking (constant-folded under jit).
# ----------------------------------------------------------------------------
def _pack_rdb_conv(w, b, c0, c0p, n_src):
    """(Cout, Cin, 3, 3) -> (Cout_p, 9*Cin_p) matching the im2col stack order."""
    cout = w.shape[0]
    coutp = _r8(cout)
    cols, off = [], 0
    for s in range(n_src):
        cs = c0 if s == 0 else _GD
        csp = c0p if s == 0 else _GD
        ws = jnp.transpose(w[:, off:off + cs, :, :], (0, 2, 3, 1))
        ws = ws.reshape(cout, 9, cs)
        if csp > cs:
            ws = jnp.pad(ws, ((0, 0), (0, 0), (0, csp - cs)))
        cols.append(ws.reshape(cout, 9 * csp))
        off += cs
    wk = jnp.concatenate(cols, axis=1)
    if coutp > cout:
        wk = jnp.pad(wk, ((0, coutp - cout), (0, 0)))
    bk = jnp.pad(b, (0, coutp - cout)).reshape(coutp, 1)
    return wk, bk


def _pack_conv3x3(w, b):
    cout, cin = w.shape[0], w.shape[1]
    coutp, cinp = _r8(cout), _r8(cin)
    wt = jnp.transpose(w, (2, 3, 0, 1)).reshape(9, cout, cin)
    wt = jnp.pad(wt, ((0, 0), (0, coutp - cout), (0, cinp - cin)))
    bk = jnp.pad(b, (0, coutp - cout)).reshape(coutp, 1)
    return wt, bk


def _pack_upconv(w, b):
    """ConvTranspose2d(k=4, s=2, p=1) -> 4 output phases x 4 taps."""
    cin, cout = w.shape[0], w.shape[1]
    cinp, coutp = _r8(cin), _r8(cout)
    taps, offs = [], []
    for py, px in ((0, 0), (0, 1), (1, 0), (1, 1)):
        dh1 = -1 if py == 0 else 1
        dw1 = -1 if px == 0 else 1
        for dh, dw in ((0, 0), (0, dw1), (dh1, 0), (dh1, dw1)):
            ky = py + 1 - 2 * dh
            kx = px + 1 - 2 * dw
            wt = jnp.transpose(w[:, :, ky, kx])          # (cout, cin)
            taps.append(jnp.pad(wt, ((0, coutp - cout), (0, cinp - cin))))
            offs.append((dh, dw))
    wk = jnp.stack(taps)                                 # (16, coutp, cinp)
    bk = jnp.pad(b, (0, coutp - cout)).reshape(coutp, 1)
    return wk, bk, tuple(offs)


def _pack_1x1(w, b, splits):
    cout = w.shape[0]
    coutp = _r8(cout)
    cols, off = [], 0
    for c, cp_ in splits:
        ws = w[:, off:off + c, 0, 0]
        if cp_ > c:
            ws = jnp.pad(ws, ((0, 0), (0, cp_ - c)))
        cols.append(ws)
        off += c
    wk = jnp.concatenate(cols, axis=1)
    if coutp > cout:
        wk = jnp.pad(wk, ((0, coutp - cout), (0, 0)))
    bk = jnp.pad(b, (0, coutp - cout)).reshape(coutp, 1)
    return wk, bk


# ----------------------------------------------------------------------------
# Module applies (activations live in the zero-halo flat layout).
# ----------------------------------------------------------------------------
def _apply_down(p, x, N, H, W):
    """3x3 stride-2 conv + GELU.  x: (Cin_p, Pp) halo at (H, W)."""
    Pp, Wr, mask = _halo_geom(N, H, W)
    shifts = _shifts3x3(Wr, Pp)
    wk, bk = _pack_conv3x3(p['w_torch'], p['b_torch'])
    call = _build_scale_call(wk.shape[1], Pp, shifts, (tuple(range(9)),),
                             _matmul_precision())
    y = call(x, mask, wk, bk)
    cout = p['w_torch'].shape[0]
    # TODO(synk): compute only the even output positions inside the kernel
    # instead of the full stride-1 map + host-side decimation.
    y = _from_halo(y, cout, N, H, W)[:, :, ::2, ::2]
    return _to_halo(y)


def _apply_up(p, x, N, H, W):
    """ConvTranspose2d(4, s2, p1) + GELU via 4-phase sub-pixel decomposition."""
    Pp, Wr, mask = _halo_geom(N, H, W)
    wk, bk, offs = _pack_upconv(p['w_torch'], p['b_torch'])
    shifts = _to_shifts(tuple(dh * Wr + dw for dh, dw in offs), Pp)
    phase_taps = (tuple(range(0, 4)), tuple(range(4, 8)),
                  tuple(range(8, 12)), tuple(range(12, 16)))
    coutp = wk.shape[1]
    call = _build_scale_call(coutp, Pp, shifts, phase_taps, _matmul_precision())
    y4 = call(x, mask, wk, bk)
    cout = p['w_torch'].shape[1]
    phases = [_from_halo(y4[i * coutp:(i + 1) * coutp], cout, N, H, W)
              for i in range(4)]
    ph = jnp.stack(phases).reshape(2, 2, cout, N, H, W)
    y = jnp.transpose(ph, (2, 3, 4, 0, 5, 1)).reshape(cout, N, 2 * H, 2 * W)
    return _to_halo(y)


def _apply_rrdb(rp, x, c0, N, H, W):
    """One fused pallas_call for a whole RRDB.  x: (c0p, Pp) halo layout."""
    c0p = x.shape[0]
    Pp, Wr, mask = _halo_geom(N, H, W)
    shifts = _shifts3x3(Wr, Pp)
    args = [x, mask]
    for rdb in ('RDB1', 'RDB2', 'RDB3'):
        for i, cname in enumerate(('conv1', 'conv2', 'conv3', 'conv4', 'conv5')):
            cp_ = rp[rdb][cname]
            wk, bk = _pack_rdb_conv(cp_['w_torch'], cp_['b_torch'], c0, c0p,
                                    i + 1)
            args += [wk, bk]
    call = _build_rrdb_call(c0p, Pp, shifts, _matmul_precision())
    return call(*args)


def _apply_1x1(p, xs, real_cs, N, H, W):
    Pp, _, mask = _halo_geom(N, H, W)
    splits = tuple((c, x.shape[0]) for c, x in zip(real_cs, xs))
    wk, bk = _pack_1x1(p['w_torch'], p['b_torch'], splits)
    call = _build_1x1_call(wk.shape[0], Pp, _matmul_precision())
    y = call(jnp.concatenate(xs, axis=0), mask, wk, bk)
    return _from_halo(y, p['w_torch'].shape[0], N, H, W)


def csi_forward(params, high, mid, low, dim):
    """Inputs/outputs in internal (C, N, H, W) layout."""
    _, N, H, W = high.shape
    Hm, Wm, Hl, Wl = H // 2, W // 2, H // 4, W // 4
    high_h, mid_h, low_h = _to_halo(high), _to_halo(mid), _to_halo(low)

    t = _apply_up(params['low_up1']['conv'], low_h, N, Hl, Wl)
    l2m = _apply_rrdb(params['low_up1']['rrdb'], t, dim * 2, N, Hm, Wm)
    t = _apply_up(params['low_up2']['conv'], l2m, N, Hm, Wm)
    l2h = _apply_rrdb(params['low_up2']['rrdb'], t, dim, N, H, W)
    t = _apply_up(params['mid_up']['conv'], mid_h, N, Hm, Wm)
    m2h = _apply_rrdb(params['mid_up']['rrdb'], t, dim, N, H, W)
    t = _apply_down(params['mid_down']['conv'], mid_h, N, Hm, Wm)
    m2l = _apply_rrdb(params['mid_down']['rrdb'], t, dim * 4, N, Hl, Wl)
    t = _apply_down(params['high_down1']['conv'], high_h, N, H, W)
    h2m = _apply_rrdb(params['high_down1']['rrdb'], t, dim * 2, N, Hm, Wm)
    t = _apply_down(params['high_down2']['conv'], h2m, N, Hm, Wm)
    h2l = _apply_rrdb(params['high_down2']['rrdb'], t, dim * 4, N, Hl, Wl)

    low_o = _apply_1x1(params['conv_l'], [low_h, m2l, h2l],
                       (dim * 4, dim * 4, dim * 4), N, Hl, Wl)
    mid_o = _apply_1x1(params['conv_m'], [l2m, mid_h, h2m],
                       (dim * 2, dim * 2, dim * 2), N, Hm, Wm)
    high_o = _apply_1x1(params['conv_h'], [l2h, m2h, high_h],
                        (dim, dim, dim), N, H, W)
    # TODO(synk): on v7x, split the high-resolution calls over the 2 TensorCores
    # (grid over whole images) once dispatch overhead is no longer dominant.
    # TODO(synk): pack the two low-resolution branches onto one 128-lane slab
    # to recover the ~60% lane padding waste at 4x4 resolution.
    return high_o, mid_o, low_o


# ----------------------------------------------------------------------------
# Parameter initialisation (PyTorch-style uniform init, torch weight layout).
# ----------------------------------------------------------------------------
def _init_conv(key, cin, cout, k, stride=1, transpose=False):
    kw, kb = jax.random.split(key)
    if transpose:
        fan_in = cout * k * k
        bound = 1.0 / math.sqrt(fan_in)
        w = jax.random.uniform(kw, (cin, cout, k, k), jnp.float32, -bound, bound)
    else:
        fan_in = cin * k * k
        bound = 1.0 / math.sqrt(fan_in)
        w = jax.random.uniform(kw, (cout, cin, k, k), jnp.float32, -bound, bound)
    b = jax.random.uniform(kb, (cout,), jnp.float32, -bound, bound)
    return dict(w_torch=w, b_torch=b, k=k, stride=stride, transpose=transpose)


def _init_rdb(key, dim, gd=_GD):
    ks = jax.random.split(key, 5)
    return {'conv1': _init_conv(ks[0], dim, gd, 3),
            'conv2': _init_conv(ks[1], dim + gd, gd, 3),
            'conv3': _init_conv(ks[2], dim + 2 * gd, gd, 3),
            'conv4': _init_conv(ks[3], dim + 3 * gd, gd, 3),
            'conv5': _init_conv(ks[4], dim + 4 * gd, dim, 3)}


def _init_rrdb(key, dim, gc=_GD):
    k1, k2, k3 = jax.random.split(key, 3)
    return {'RDB1': _init_rdb(k1, dim, gc),
            'RDB2': _init_rdb(k2, dim, gc),
            'RDB3': _init_rdb(k3, dim, gc)}


def _init_csi(key, dim):
    ks = jax.random.split(key, 15)
    return {
        'low_up1': {'conv': _init_conv(ks[0], dim * 4, dim * 2, 4, 2, True),
                    'rrdb': _init_rrdb(ks[1], dim * 2)},
        'low_up2': {'conv': _init_conv(ks[2], dim * 2, dim, 4, 2, True),
                    'rrdb': _init_rrdb(ks[3], dim)},
        'mid_up': {'conv': _init_conv(ks[4], dim * 2, dim, 4, 2, True),
                   'rrdb': _init_rrdb(ks[5], dim)},
        'mid_down': {'conv': _init_conv(ks[6], dim * 2, dim * 4, 3, 2),
                     'rrdb': _init_rrdb(ks[7], dim * 4)},
        'high_down1': {'conv': _init_conv(ks[8], dim, dim * 2, 3, 2),
                       'rrdb': _init_rrdb(ks[9], dim * 2)},
        'high_down2': {'conv': _init_conv(ks[10], dim * 2, dim * 4, 3, 2),
                       'rrdb': _init_rrdb(ks[11], dim * 4)},
        'conv_l': _init_conv(ks[12], dim * 12, dim * 4, 1),
        'conv_m': _init_conv(ks[13], dim * 6, dim * 2, 1),
        'conv_h': _init_conv(ks[14], dim * 3, dim, 1),
    }


# ----------------------------------------------------------------------------
# Pure-JAX (XLA) reference in NCHW, mirroring the PyTorch module exactly.
# ----------------------------------------------------------------------------
def _ref_gelu(x):
    return 0.5 * x * (1.0 + _erf_exact(x * _SQRT1_2))


def _ref_basic_conv(p, x):
    w, b, k, stride = p['w_torch'], p['b_torch'], p['k'], p['stride']
    if p['transpose']:
        w_conv = jnp.transpose(w, (1, 0, 2, 3))[:, :, ::-1, ::-1]
        cpad = k - 1 - (k // 2 - 1)
        y = jax.lax.conv_general_dilated(
            x, w_conv, window_strides=(1, 1),
            padding=((cpad, cpad), (cpad, cpad)), lhs_dilation=(stride, stride),
            dimension_numbers=('NCHW', 'OIHW', 'NCHW'),
            precision=jax.lax.Precision.HIGHEST)
    else:
        pad = k // 2
        y = jax.lax.conv_general_dilated(
            x, w, window_strides=(stride, stride),
            padding=((pad, pad), (pad, pad)),
            dimension_numbers=('NCHW', 'OIHW', 'NCHW'),
            precision=jax.lax.Precision.HIGHEST)
    return _ref_gelu(y + b[None, :, None, None])


def _ref_rdb(p, x):
    x1 = _ref_basic_conv(p['conv1'], x)
    x2 = _ref_basic_conv(p['conv2'], jnp.concatenate([x, x1], axis=1))
    x3 = _ref_basic_conv(p['conv3'], jnp.concatenate([x, x1, x2], axis=1))
    x4 = _ref_basic_conv(p['conv4'], jnp.concatenate([x, x1, x2, x3], axis=1))
    x5 = _ref_basic_conv(p['conv5'], jnp.concatenate([x, x1, x2, x3, x4], axis=1))
    return x5 * 0.2 + x


def _ref_rrdb(p, x):
    out = _ref_rdb(p['RDB1'], x)
    out = _ref_rdb(p['RDB2'], out)
    out = _ref_rdb(p['RDB3'], out)
    return out * 0.2 + x


def _ref_seq(p, x):
    return _ref_rrdb(p['rrdb'], _ref_basic_conv(p['conv'], x))


def _ref_csi(params, shortcuts):
    high, mid, low = shortcuts
    l2m = _ref_seq(params['low_up1'], low)
    l2h = _ref_seq(params['low_up2'], l2m)
    m2h = _ref_seq(params['mid_up'], mid)
    m2l = _ref_seq(params['mid_down'], mid)
    h2m = _ref_seq(params['high_down1'], high)
    h2l = _ref_seq(params['high_down2'], h2m)
    low_o = _ref_basic_conv(params['conv_l'],
                            jnp.concatenate([low, m2l, h2l], axis=1))
    mid_o = _ref_basic_conv(params['conv_m'],
                            jnp.concatenate([l2m, mid, h2m], axis=1))
    high_o = _ref_basic_conv(params['conv_h'],
                             jnp.concatenate([l2h, m2h, high], axis=1))
    return [high_o, mid_o, low_o]


# ----------------------------------------------------------------------------
if __name__ == "__main__":
    dim = 4
    N, H, W = 2, 16, 16

    key = jax.random.PRNGKey(0)
    kp, kh, km, kl = jax.random.split(key, 4)
    params = _init_csi(kp, dim)

    high = jax.random.normal(kh, (N, dim, H, W), jnp.float32)
    mid = jax.random.normal(km, (N, dim * 2, H // 2, W // 2), jnp.float32)
    low = jax.random.normal(kl, (N, dim * 4, H // 4, W // 4), jnp.float32)

    # Warm the one-time hardware probes outside of any jit trace.
    _roll_moves_to_higher_indices()
    _matmul_precision()

    to_internal = lambda a: jnp.transpose(a, (1, 0, 2, 3))
    to_nchw = lambda a: jnp.transpose(a, (1, 0, 2, 3))

    fwd = jax.jit(lambda h, m, l: csi_forward(params, h, m, l, dim))
    high_o, mid_o, low_o = fwd(to_internal(high), to_internal(mid),
                               to_internal(low))
    outs = [to_nchw(o) for o in (high_o, mid_o, low_o)]
    outs = jax.block_until_ready(outs)

    refs = _ref_csi(params, (high, mid, low))
    refs = jax.block_until_ready(refs)

    for name, o, r in zip(("high", "mid", "low"), outs, refs):
        assert o.shape == r.shape, (name, o.shape, r.shape)
        err = float(jnp.max(jnp.abs(o - r)))
        assert err < 2e-3, (name, err)

    print("KERNEL_OK")
</pallas_src>

<mosaic_0001>
module attributes {stable_mosaic.version = 11 : i64} {
  func.func @probe(%arg0: memref<1x128xf32, #tpu.memory_space<vmem>>, %arg1: memref<1x128xf32, #tpu.memory_space<vmem>>) attributes {dimension_semantics = [], scalar_prefetch = 0 : i64, scratch_operands = 0 : i64, tpu.core_type = #tpu.core_type<tc>} {
    %c0 = arith.constant 0 : index
    %c0_0 = arith.constant 0 : index
    %0 = vector.load %arg0[%c0, %c0_0] : memref<1x128xf32, #tpu.memory_space<vmem>>, vector<1x128xf32>
    %c1_i32 = arith.constant 1 : i32
    %1 = tpu.dynamic_rotate %0 by %c1_i32 dim 1 : vector<1x128xf32>, i32 -> vector<1x128xf32>
    %c0_1 = arith.constant 0 : index
    %c0_2 = arith.constant 0 : index
    %2 = vector.load %arg1[%c0_1, %c0_2] : memref<1x128xf32, #tpu.memory_space<vmem>>, vector<1x128xf32>
    tpu.vector_store %arg1[%c0_1, %c0_2], %1 {strides = array<i32>} : memref<1x128xf32, #tpu.memory_space<vmem>>, vector<1x128xf32>,
    return
  }
}

</mosaic_0001>

<bundles_post_ra>
// kernel: tpu_custom_call.1
= control target key start
LH: loop header
LB: loop body
LE: loop exit
PB: predicated region body
PF: predicated region fallthrough
CT: control target
= control target key end

     0   :  { %6 = vsyncpa [#allocation3], 0  ;;  %s106_s0 = inlined_call_operand.hbm [shape: f32[1,128], index: 0, kind: input, shape index: {}]   ;;  %s107_s1 = inlined_call_operand.hbm [shape: f32[1,128], index: 1, kind: output, shape index: {}]  }
   0x1   :  { %7 = vsyncpa [#allocation4], 0  ;;  %s87_s6 = smov [#allocation2]  }
   0x2   :  { %s14_s7 = sshll.u32 %s87_s6, 4  ;;  %s15_s7 = int_to_ptr.vmem [resolvable:$true] %s14_s7 }
   0x3   :  { %s51_s8 = scalar_lea.vmem %s15_s7, 16  ;;  %s55_s9 = scalar_lea.vmem %s15_s7, 32 }
   0x4   :  { %p52_p0 = scmp.ne.s32.totalorder %s15_s7, %s51_s8  ;;  %p56_p1 = scmp.lt.s32.totalorder %s15_s7, %s15_s7 }
   0x5   :  { %p57_p2 = scmp.lt.s32.totalorder %s55_s9, %s51_s8 }
   0x7   :  { %p58_p3 = por %p57_p2, %p56_p1 }
   0x9   :  { %p59_p4 = pnand %p58_p3, %p52_p0 }
   0xb   :  { %62 = shalt.err (!%p59_p4)
}
   0xc   :  { %17 = dma.hbm_to_vmem [thread:$0]  %s106_s0, 16, %s15_s7, [#allocation3]  }
   0xd   :  { %83 = dma.done.wait [#allocation3], 16  }
   0xe   :  { %84 = vsyncadd [#allocation3], 4294967280  ;;  %v21_v0 = vld [vmem:[#allocation2] sm:$0x1]  ;;  %s88_s12 = smov 1   ;;  %s89_s13 = smov [#allocation5]  }
   0xf   :  { %22 = vrot.lane.b32.xlu0 %v21_v0, %s88_s12  ;;  %s31_s14 = sshll.u32 %s89_s13, 4  ;;  %s32_s14 = int_to_ptr.vmem [resolvable:$true] %s31_s14 }
  0x10   :  { %s63_s15 = scalar_lea.vmem %s32_s14, 16  ;;  %s67_s16 = scalar_lea.vmem %s32_s14, 32 }
  0x11   :  { %p64_p5 = scmp.ne.s32.totalorder %s32_s14, %s63_s15  ;;  %p68_p6 = scmp.lt.s32.totalorder %s32_s14, %s32_s14 }
  0x12   :  { %p69_p7 = scmp.lt.s32.totalorder %s67_s16, %s63_s15 }
  0x14   :  { %p70_p8 = por %p69_p7, %p68_p6 }
  0x16   :  { %p71_p9 = pnand %p70_p8, %p64_p5 }
  0x81   :  { %v23_v1 = vpop.permute.xlu0 %22 }
  0x82   :  { %24 = vst [vmem:[#allocation5] sm:$0x1] %v23_v1 }
  0x83   :  { %74 = shalt.err (!%p71_p9)
}
  0x84   :  { %34 = dma.vmem_to_hbm [thread:$0]  %s32_s14, 16, %s107_s1, [#allocation4]  }
  0x85   :  { %85 = dma.done.wait [#allocation4], 16  }
  0x86   :  { %86 = vsyncadd [#allocation4], 4294967280 }
  0x87   :  { %38 = vsyncpa [#allocation3], 1 }
  0x88   :  { %39 = vsyncpa [#allocation4], 1 }

</bundles_post_ra>
